<compile_context>
chip_gen: v5e
topology: v5e:2x2
jax: 0.10.0
libtpu: 0.0.40
codegen_flags: <defaults>
</compile_context>

<pallas_src>
import functools

import jax
import jax.numpy as jnp
from jax.experimental import pallas as pl
from jax.experimental.pallas import tpu as pltpu

GAMMA = 2.0
_PAD_X = 1e4   # exp(-|pad_x|) underflows to 0 in f32  ->  bce == 0 exactly for padded rows
_PAD_Y = 1.0


def _round_up(v, m):
    return ((v + m - 1) // m) * m


def _focal_loss_kernel(x_ref, y_ref, w_ref, o_ref, *, gamma):
    j = pl.program_id(1)          # reduction ("arbitrary") axis

    @pl.when(j == 0)
    def _():
        o_ref[...] = jnp.zeros_like(o_ref)

    x = x_ref[...].astype(jnp.float32)        # (TR, C)
    y = y_ref[...].astype(jnp.float32)        # (TR, C)
    w = w_ref[...].astype(jnp.float32)        # (1,  C) -> broadcast over rows

    # numerically-stable binary_cross_entropy_with_logits (reduce=False), weighted
    bce = (jnp.maximum(x, 0.0) - x * y + jnp.log1p(jnp.exp(-jnp.abs(x)))) * w
    logpt = -bce
    pt = jnp.exp(logpt)
    u = 1.0 - pt

    g = float(gamma)
    gi = int(g)
    if g == gi and gi >= 1:
        # integer gamma -> repeated multiplies (avoids EUP pow = exp+log)
        mod = u
        for _ in range(gi - 1):
            mod = mod * u
    elif g == 0.0:
        mod = jnp.ones_like(u)
    else:
        mod = u ** g
    focal = -mod * logpt                      # (TR, C)

    # vreg-shaped partial accumulation: fold rows 8-at-a-time (pure VPU adds,
    # layout-preserving reshape); the expensive cross-lane reduce is deferred
    # to the JAX wrapper (runs once on a tiny array).
    tr, c = focal.shape
    partial = jnp.sum(focal.reshape(tr // 8, 8, c), axis=0)     # (8, C)
    o_ref[...] += partial.reshape(o_ref.shape)                  # (1, 8, C)


def focal_loss(x, y, weight, gamma=GAMMA, tile_rows=512, num_parallel_blocks=2):
    """x, y: [N, C]; weight: [C] per-class weights. Returns scalar mean focal loss."""
    N, C = x.shape
    w2d = jnp.asarray(weight).reshape(1, C).astype(jnp.float32)

    # --- tile selection -------------------------------------------------------
    # Rows per block: multiple of 32 (covers f32/bf16/int8 sublane packing), capped
    # so each f32-equivalent input block is <= ~4 MiB -> 2 inputs x 2 pipeline
    # buffers <= ~16 MiB (fits v7x's 64 MiB VMEM with room to spare).
    bytes_per_elem = max(int(x.dtype.itemsize), int(y.dtype.itemsize), 4)
    cap = max(32, ((4 * 1024 * 1024) // (C * bytes_per_elem)) // 32 * 32)
    tr = max(32, (int(tile_rows) // 32) * 32)
    tr = min(tr, cap, _round_up(N, 32))

    blocks = pl.cdiv(N, tr)
    P = max(1, min(int(num_parallel_blocks), blocks))   # leading "parallel" axis
    J = pl.cdiv(blocks, P)                              # reduction steps per core
    n_pad = P * J * tr

    if n_pad != N:
        pad = n_pad - N
        # Padded rows produce bce == 0 exactly in f32 -> focal == 0 -> no masking.
        x = jnp.pad(x, ((0, pad), (0, 0)), constant_values=_PAD_X)
        y = jnp.pad(y, ((0, pad), (0, 0)), constant_values=_PAD_Y)

    # Explicit scoped-VMEM budget: double-buffered x+y blocks + weight + outputs + slack.
    block_bytes = tr * C * (int(x.dtype.itemsize) + int(y.dtype.itemsize))
    vmem_need = 2 * block_bytes + 2 * (C * 4) + 2 * (8 * C * 4) + (2 << 20)
    vmem_limit = int(min(48 * 1024 * 1024, max(2 * vmem_need, 16 * 1024 * 1024)))

    kernel = functools.partial(_focal_loss_kernel, gamma=float(gamma))

    partials = pl.pallas_call(
        kernel,
        out_shape=jax.ShapeDtypeStruct((P, 8, C), jnp.float32),
        grid_spec=pltpu.PrefetchScalarGridSpec(
            num_scalar_prefetch=0,
            grid=(P, J),
            in_specs=[
                pl.BlockSpec((tr, C), lambda p, j: (p * J + j, 0)),   # x
                pl.BlockSpec((tr, C), lambda p, j: (p * J + j, 0)),   # y
                pl.BlockSpec((1, C), lambda p, j: (0, 0)),            # weight (broadcast)
            ],
            out_specs=pl.BlockSpec((1, 8, C), lambda p, j: (p, 0, 0)),
        ),
        compiler_params=pltpu.CompilerParams(
            dimension_semantics=("parallel", "arbitrary"),
            vmem_limit_bytes=vmem_limit,
        ),
    )(x, y, w2d)

    # Single tiny cross-lane reduce + mean (true element count, ignores padding).
    return jnp.sum(partials, dtype=jnp.float32) / jnp.float32(N * C)


def focal_loss_ref(x, y, weight, gamma=GAMMA):
    x = x.astype(jnp.float32)
    y = y.astype(jnp.float32)
    w = jnp.asarray(weight).reshape(1, -1).astype(jnp.float32)
    bce = (jnp.maximum(x, 0.0) - x * y + jnp.log1p(jnp.exp(-jnp.abs(x)))) * w
    logpt = -bce
    pt = jnp.exp(logpt)
    return jnp.mean(-((1.0 - pt) ** gamma) * logpt)


if __name__ == "__main__":
    key = jax.random.PRNGKey(0)
    kx, ky, kx2, ky2 = jax.random.split(key, 4)

    # small shape consistent with the module: batch of logits over C classes
    N, C = 16, 128
    x = jax.random.normal(kx, (N, C), dtype=jnp.float32)
    y = jax.random.bernoulli(ky, 0.3, (N, C)).astype(jnp.float32)
    weight = jnp.linspace(0.5, 1.5, C, dtype=jnp.float32)

    loss = jax.block_until_ready(focal_loss(x, y, weight))
    ref = focal_loss_ref(x, y, weight)
    assert jnp.allclose(loss, ref, rtol=1e-5, atol=1e-6), (loss, ref)

    # second case: exercises row padding + the 2-D (parallel, arbitrary) grid path
    N2, C2 = 300, 256
    x2 = jax.random.normal(kx2, (N2, C2), dtype=jnp.float32)
    y2 = jax.random.bernoulli(ky2, 0.5, (N2, C2)).astype(jnp.float32)
    w2 = jnp.linspace(0.25, 2.0, C2, dtype=jnp.float32)
    loss2 = jax.block_until_ready(focal_loss(x2, y2, w2, tile_rows=64))
    ref2 = focal_loss_ref(x2, y2, w2)
    assert jnp.allclose(loss2, ref2, rtol=1e-4, atol=1e-6), (loss2, ref2)

    print("KERNEL_OK")
</pallas_src>

<mosaic_0001>
module attributes {stable_mosaic.version = 11 : i64} {
  func.func @_focal_loss_kernel(%arg0: i32, %arg1: i32, %arg2: memref<32x128xf32, #tpu.memory_space<vmem>>, %arg3: memref<32x128xf32, #tpu.memory_space<vmem>>, %arg4: memref<1x128xf32, #tpu.memory_space<vmem>>, %arg5: memref<1x8x128xf32, #tpu.memory_space<vmem>>) attributes {dimension_semantics = [#tpu.dimension_semantics<parallel>, #tpu.dimension_semantics<arbitrary>], iteration_bounds = array<i64: 1, 1>, scalar_prefetch = 0 : i64, scratch_operands = 0 : i64, tpu.core_type = #tpu.core_type<tc>, window_params = [{transform_indices = @transform_0, window_bounds = array<i64: 32, 128>}, {transform_indices = @transform_1, window_bounds = array<i64: 32, 128>}, {pipeline_mode = #tpu.pipeline_mode<synchronous>, transform_indices = @transform_2, window_bounds = array<i64: 1, 128>}, {transform_indices = @transform_3, window_bounds = array<i64: 1, 8, 128>}]} {
    %c0_i32 = arith.constant 0 : i32
    %0 = arith.cmpi eq, %arg1, %c0_i32 : i32
    %1 = arith.extui %0 : i1 to i32
    %c0_i32_0 = arith.constant 0 : i32
    %2 = arith.cmpi ne, %1, %c0_i32_0 : i32
    scf.if %2 {
      %cst_17 = arith.constant 0.000000e+00 : f32
      %33 = vector.broadcast %cst_17 : f32 to vector<1x8x128xf32>
      %c0_18 = arith.constant 0 : index
      %c0_19 = arith.constant 0 : index
      %c0_20 = arith.constant 0 : index
      %34 = vector.load %arg5[%c0_18, %c0_19, %c0_20] : memref<1x8x128xf32, #tpu.memory_space<vmem>>, vector<1x8x128xf32>
      tpu.vector_store %arg5[%c0_18, %c0_19, %c0_20], %33 {strides = array<i32>} : memref<1x8x128xf32, #tpu.memory_space<vmem>>, vector<1x8x128xf32>,
    } else {
    }
    %c0 = arith.constant 0 : index
    %c0_1 = arith.constant 0 : index
    %3 = vector.load %arg2[%c0, %c0_1] : memref<32x128xf32, #tpu.memory_space<vmem>>, vector<32x128xf32>
    %c0_2 = arith.constant 0 : index
    %c0_3 = arith.constant 0 : index
    %4 = vector.load %arg3[%c0_2, %c0_3] : memref<32x128xf32, #tpu.memory_space<vmem>>, vector<32x128xf32>
    %c0_4 = arith.constant 0 : index
    %c0_5 = arith.constant 0 : index
    %5 = vector.load %arg4[%c0_4, %c0_5] : memref<1x128xf32, #tpu.memory_space<vmem>>, vector<1x128xf32>
    %cst = arith.constant 0.000000e+00 : f32
    %6 = vector.broadcast %cst : f32 to vector<32x128xf32>
    %7 = arith.maximumf %3, %6 : vector<32x128xf32>
    %8 = arith.mulf %3, %4 : vector<32x128xf32>
    %9 = arith.subf %7, %8 : vector<32x128xf32>
    %10 = math.absf %3 : vector<32x128xf32>
    %cst_6 = arith.constant 0.000000e+00 : f32
    %11 = vector.broadcast %cst_6 : f32 to vector<32x128xf32>
    %12 = arith.subf %11, %10 : vector<32x128xf32>
    %13 = math.exp %12 : vector<32x128xf32>
    %14 = math.log1p %13 : vector<32x128xf32>
    %15 = arith.addf %9, %14 : vector<32x128xf32>
    %16 = vector.broadcast %5 : vector<1x128xf32> to vector<32x128xf32>
    %17 = arith.mulf %15, %16 : vector<32x128xf32>
    %cst_7 = arith.constant 0.000000e+00 : f32
    %18 = vector.broadcast %cst_7 : f32 to vector<32x128xf32>
    %19 = arith.subf %18, %17 : vector<32x128xf32>
    %20 = math.exp %19 : vector<32x128xf32>
    %cst_8 = arith.constant 1.000000e+00 : f32
    %21 = vector.broadcast %cst_8 : f32 to vector<32x128xf32>
    %22 = arith.subf %21, %20 : vector<32x128xf32>
    %23 = arith.mulf %22, %22 : vector<32x128xf32>
    %cst_9 = arith.constant 0.000000e+00 : f32
    %24 = vector.broadcast %cst_9 : f32 to vector<32x128xf32>
    %25 = arith.subf %24, %23 : vector<32x128xf32>
    %26 = arith.mulf %25, %19 : vector<32x128xf32>
    %27 = vector.shape_cast %26 : vector<32x128xf32> to vector<4x8x128xf32>
    %cst_10 = arith.constant dense<0.000000e+00> : vector<8x128xf32>
    %28 = vector.multi_reduction <add>, %27, %cst_10 [0] : vector<4x8x128xf32> to vector<8x128xf32>
    %c0_11 = arith.constant 0 : index
    %c0_12 = arith.constant 0 : index
    %c0_13 = arith.constant 0 : index
    %29 = vector.load %arg5[%c0_11, %c0_12, %c0_13] : memref<1x8x128xf32, #tpu.memory_space<vmem>>, vector<1x8x128xf32>
    %30 = vector.shape_cast %28 : vector<8x128xf32> to vector<1x8x128xf32>
    %31 = arith.addf %29, %30 : vector<1x8x128xf32>
    %c0_14 = arith.constant 0 : index
    %c0_15 = arith.constant 0 : index
    %c0_16 = arith.constant 0 : index
    %32 = vector.load %arg5[%c0_14, %c0_15, %c0_16] : memref<1x8x128xf32, #tpu.memory_space<vmem>>, vector<1x8x128xf32>
    tpu.vector_store %arg5[%c0_14, %c0_15, %c0_16], %31 {strides = array<i32>} : memref<1x8x128xf32, #tpu.memory_space<vmem>>, vector<1x8x128xf32>,
    return
  }
  func.func @transform_0(%arg0: i32, %arg1: i32) -> (i32, i32) {
    %c1_i32 = arith.constant 1 : i32
    %0 = arith.muli %arg0, %c1_i32 : i32
    %1 = arith.addi %0, %arg1 : i32
    %c0_i32 = arith.constant 0 : i32
    %c0_i32_0 = arith.constant 0 : i32
    return %1, %c0_i32 : i32, i32
  }
  func.func @transform_1(%arg0: i32, %arg1: i32) -> (i32, i32) {
    %c1_i32 = arith.constant 1 : i32
    %0 = arith.muli %arg0, %c1_i32 : i32
    %1 = arith.addi %0, %arg1 : i32
    %c0_i32 = arith.constant 0 : i32
    %c0_i32_0 = arith.constant 0 : i32
    return %1, %c0_i32 : i32, i32
  }
  func.func @transform_2(%arg0: i32, %arg1: i32) -> (i32, i32) {
    %c0_i32 = arith.constant 0 : i32
    %c0_i32_0 = arith.constant 0 : i32
    %c0_i32_1 = arith.constant 0 : i32
    return %c0_i32, %c0_i32_0 : i32, i32
  }
  func.func @transform_3(%arg0: i32, %arg1: i32) -> (i32, i32, i32) {
    %c0_i32 = arith.constant 0 : i32
    %c0_i32_0 = arith.constant 0 : i32
    %c0_i32_1 = arith.constant 0 : i32
    return %arg0, %c0_i32, %c0_i32_0 : i32, i32, i32
  }
}

</mosaic_0001>

<bundles_post_ra>
// kernel: tpu_custom_call.1
= control target key start
LH: loop header
LB: loop body
LE: loop exit
PB: predicated region body
PF: predicated region fallthrough
CT: control target
= control target key end

     0   :  { %8 = vsyncpa [#allocation3], 0  ;;  %s368_s0 = inlined_call_operand.hbm [shape: f32[32,128], index: 0, kind: input, shape index: {}]   ;;  %s369_s1 = inlined_call_operand.hbm [shape: f32[32,128], index: 1, kind: input, shape index: {}]   ;;  %s370_s2 = inlined_call_operand.vmem [shape: f32[1,128], index: 2, kind: input, shape index: {}]   ;;  %s371_s3 = inlined_call_operand.hbm [shape: f32[1,8,128], index: 3, kind: output, shape index: {}]  }
   0x1   :  { %9 = vsyncpa [#allocation6], 0 }
   0x2   :  { %10 = vsyncpa [#allocation4], 0  ;;  %s19_s14 = sshll.u32 %s368_s0, 4  ;;  %s309_s15 = smov [#allocation2]   ;;  %s20_s14 = int_to_ptr.hbm [resolvable:$true] %s19_s14 }
   0x3   :  { %s21_s16 = sshll.u32 %s309_s15, 4  ;;  %s36_s19 = sshll.u32 %s369_s1, 4  ;;  %s22_s16 = int_to_ptr.vmem [resolvable:$true] %s21_s16  ;;  %s37_s19 = int_to_ptr.hbm [resolvable:$true] %s36_s19 }
   0x4   :  { %s310_s20 = smov 128   ;;  %s311_s21 = smov 8  }
   0x5   :  { %27 = dma.hbm_to_vmem [thread:$0]  %s20_s14, 512, %s22_s16, [#allocation3], %s310_s20, %s310_s20, %s311_s21  }
   0x6   :  { %s312_s22 = smov [#allocation5]  }
   0x7   :  { %s38_s23 = sshll.u32 %s312_s22, 4  ;;  %s39_s23 = int_to_ptr.vmem [resolvable:$true] %s38_s23 }
   0x8   :  { %44 = dma.hbm_to_vmem [thread:$0]  %s37_s19, 512, %s39_s23, [#allocation6], %s310_s20, %s310_s20, %s311_s21  }
   0x9   :  { %303 = dma.done.wait [#allocation3], 512  }
   0xa   :  { %304 = vsyncadd [#allocation3], 4294966784 }
   0xb   :  { %305 = dma.done.wait [#allocation6], 512  }
   0xc   :  { %306 = vsyncadd [#allocation6], 4294966784  ;;  %v64_v0 = vld [vmem:[#allocation2] sm:$0xff]  ;;  %v65_v1 = vld [vmem:[#allocation2 + $0x8] sm:$0xff]  ;;  %s189_s27 = sshll.u32 %s371_s3, 4  ;;  %s190_s27 = int_to_ptr.hbm [resolvable:$true] %s189_s27 }
   0xd   :  { %v340_v2 = vld [vmem:[#allocation2 + $0x10] sm:$0xff]  ;;  %v342_v3 = vld [vmem:[#allocation2 + $0x18] sm:$0xff]  ;;  %v85_v4 = vand.u32 2147483647, %v64_v0  ;;  %v86_v5 = vand.u32 2147483647, %v65_v1 }
   0xe   :  { %v87_v6 = vand.u32 2147483647, %v340_v2  ;;  %v88_v7 = vand.u32 2147483647, %v342_v3  ;;  %v68_v18 = vld [vmem:[#allocation5] sm:$0xff]  ;;  %v69_v25 = vld [vmem:[#allocation5 + $0x8] sm:$0xff] }
   0xf   :  { %v89_v8 = vsub.f32 0.0, %v85_v4  ;;  %v90_v9 = vsub.f32 0.0, %v86_v5  ;;  %v73_v26 = vmax.f32 %v64_v0, 0.0  ;;  %v74_v27 = vmax.f32 %v65_v1, 0.0  ;;  %v70_v29 = vld [vmem:[#allocation5 + $0x10] sm:$0xff]  ;;  %v71_v33 = vld [vmem:[#allocation5 + $0x18] sm:$0xff] }
  0x10   :  { %v91_v10 = vsub.f32 0.0, %v87_v6  ;;  %v92_v11 = vsub.f32 0.0, %v88_v7  ;;  %v77_v30 = vmul.f32 %v68_v18, %v64_v0  ;;  %v78_v37 = vmul.f32 %v69_v25, %v65_v1  ;;  %v206_v61 = vld [vmem:[%s370_s2] ss:$0 sm:$0xff]  ;;  %s313_s2 = smov [#allocation7]  }
  0x11   :  { %v93_v12 = vmul.f32 1.442695, %v89_v8  ;;  %v95_v13 = vmul.f32 1.442695, %v90_v9  ;;  %v75_v41 = vmax.f32 %v340_v2, 0.0  ;;  %v79_v42 = vmul.f32 %v70_v29, %v340_v2  ;;  %s187_s24 = sshll.u32 %s313_s2, 4  ;;  %s188_s24 = int_to_ptr.vmem [resolvable:$true] %s187_s24 }
  0x12   :  { %v97_v14 = vmul.f32 1.442695, %v91_v10  ;;  %v99_v15 = vmul.f32 1.442695, %v92_v11  ;;  %v76_v44 = vmax.f32 %v342_v3, 0.0  ;;  %v80_v45 = vmul.f32 %v71_v33, %v342_v3 }
  0x13   :  { %207 = vpow2.f32 %v93_v12  ;;  %v81_v49 = vsub.f32 %v73_v26, %v77_v30  ;;  %v82_v54 = vsub.f32 %v74_v27, %v78_v37  ;;  %v83_v59 = vsub.f32 %v75_v41, %v79_v42 }
  0x14   :  { %209 = vpow2.f32 %v95_v13  ;;  %v84_v2 = vsub.f32 %v76_v44, %v80_v45 }
  0x15   :  { %211 = vpow2.f32 %v97_v14 }
  0x16   :  { %213 = vpow2.f32 %v99_v15 }
  0x19   :  { %v208_v16 = vpop.eup %207 }
  0x1a   :  { %v210_v17 = vpop.eup %209  ;;  %v101_v19 = vadd.f32 1.0, %v208_v16  ;;  %v104_v20 = vmul.f32 -0.5, %v208_v16  ;;  %v107_v34 = vand.u32 2147483647, %v208_v16 }
  0x1b   :  { %v212_v21 = vpop.eup %211  ;;  %v110_v22 = vadd.f32 1.0, %v210_v17  ;;  %v113_v23 = vmul.f32 -0.5, %v210_v17  ;;  %v116_v38 = vand.u32 2147483647, %v210_v17 }
  0x1c   :  { %v214_v24 = vpop.eup %213  ;;  %215 = vlog2.f32 %v101_v19  ;;  %v119_v28 = vadd.f32 1.0, %v212_v21  ;;  %v105_v31 = vadd.f32 1.0, %v104_v20  ;;  %v122_v32 = vmul.f32 -0.5, %v212_v21 }
  0x1d   :  { %217 = vlog2.f32 %v110_v22  ;;  %v114_v35 = vadd.f32 1.0, %v113_v23  ;;  %v128_v36 = vadd.f32 1.0, %v214_v24  ;;  %v131_v40 = vmul.f32 -0.5, %v214_v24 }
  0x1e   :  { %219 = vlog2.f32 %v119_v28  ;;  %v123_v39 = vadd.f32 1.0, %v122_v32  ;;  %v125_v43 = vand.u32 2147483647, %v212_v21  ;;  %v106_v46 = vmul.f32 %v208_v16, %v105_v31 }
  0x1f   :  { %221 = vlog2.f32 %v128_v36  ;;  %v132_v47 = vadd.f32 1.0, %v131_v40  ;;  %vm350_vm0 = vcmp.lt.f32.partialorder %v107_v34, 0.0004427343  ;;  %v115_v51 = vmul.f32 %v210_v17, %v114_v35 }
  0x20   :  { %v134_v52 = vand.u32 2147483647, %v214_v24  ;;  %vm354_vm1 = vcmp.lt.f32.partialorder %v116_v38, 0.0004427343  ;;  %v124_v57 = vmul.f32 %v212_v21, %v123_v39  ;;  %vm126_vm2 = vcmp.lt.f32.partialorder %v125_v43, 0.0004427343 }
  0x21   :  { %v133_v0 = vmul.f32 %v214_v24, %v132_v47 }
  0x22   :  { %v216_v48 = vpop.eup %215  ;;  %vm135_vm3 = vcmp.lt.f32.partialorder %v134_v52, 0.0004427343 }
  0x23   :  { %v218_v53 = vpop.eup %217  ;;  %v103_v55 = vmul.f32 0.6931472, %v216_v48 }
  0x24   :  { %v220_v58 = vpop.eup %219  ;;  %v112_v60 = vmul.f32 0.6931472, %v218_v53 }
  0x25   :  { %v109_v62 = vsel %vm350_vm0, %v106_v46, %v103_v55  ;;  %v121_v63 = vmul.f32 0.6931472, %v220_v58  ;;  %v222_v1 = vpop.eup %221 }
  0x26   :  { %v118_v3 = vsel %vm354_vm1, %v115_v51, %v112_v60  ;;  %v137_v4 = vadd.f32 %v109_v62, %v81_v49  ;;  %v130_v6 = vmul.f32 0.6931472, %v222_v1 }
  0x27   :  { %v127_v5 = vsel %vm126_vm2, %v124_v57, %v121_v63  ;;  %v138_v7 = vadd.f32 %v118_v3, %v82_v54 }
  0x28   :  { %v139_v8 = vadd.f32 %v127_v5, %v83_v59  ;;  %v144_v9 = vmul.f32 %v206_v61, %v137_v4  ;;  %v136_v10 = vsel %vm135_vm3, %v133_v0, %v130_v6 }
  0x29   :  { %v145_v11 = vmul.f32 %v206_v61, %v138_v7  ;;  %v140_v12 = vadd.f32 %v136_v10, %v84_v2 }
  0x2a   :  { %v146_v13 = vmul.f32 %v206_v61, %v139_v8  ;;  %v148_v14 = vsub.f32 0.0, %v144_v9 }
  0x2b   :  { %v149_v15 = vsub.f32 0.0, %v145_v11  ;;  %v147_v16 = vmul.f32 %v206_v61, %v140_v12 }
  0x2c   :  { %v150_v17 = vsub.f32 0.0, %v146_v13  ;;  %v152_v18 = vmul.f32 1.442695, %v148_v14 }
  0x2d   :  { %v154_v19 = vmul.f32 1.442695, %v149_v15  ;;  %v151_v20 = vsub.f32 0.0, %v147_v16 }
  0x2e   :  { %223 = vpow2.f32 %v152_v18  ;;  %v156_v21 = vmul.f32 1.442695, %v150_v17 }
  0x2f   :  { %225 = vpow2.f32 %v154_v19  ;;  %v158_v22 = vmul.f32 1.442695, %v151_v20 }
  0x30   :  { %227 = vpow2.f32 %v156_v21 }
  0x31   :  { %229 = vpow2.f32 %v158_v22 }
  0x34   :  { %v224_v23 = vpop.eup %223 }
  0x35   :  { %v226_v24 = vpop.eup %225  ;;  %v160_v25 = vsub.f32 1.0, %v224_v23 }
  0x36   :  { %v228_v26 = vpop.eup %227  ;;  %v161_v27 = vsub.f32 1.0, %v226_v24 }
  0x37   :  { %v162_v28 = vsub.f32 1.0, %v228_v26  ;;  %v164_v29 = vmul.f32 %v160_v25, %v160_v25  ;;  %v230_v30 = vpop.eup %229 }
  0x38   :  { %v165_v31 = vmul.f32 %v161_v27, %v161_v27  ;;  %v163_v32 = vsub.f32 1.0, %v230_v30 }
  0x39   :  { %v166_v33 = vmul.f32 %v162_v28, %v162_v28  ;;  %v168_v34 = vsub.f32 0.0, %v164_v29 }
  0x3a   :  { %v169_v35 = vsub.f32 0.0, %v165_v31  ;;  %v167_v36 = vmul.f32 %v163_v32, %v163_v32 }
  0x3b   :  { %v170_v37 = vsub.f32 0.0, %v166_v33  ;;  %v172_v38 = vmul.f32 %v168_v34, %v148_v14 }
  0x3c   :  { %v173_v39 = vmul.f32 %v169_v35, %v149_v15  ;;  %v171_v40 = vsub.f32 0.0, %v167_v36 }
  0x3d   :  { %v174_v41 = vmul.f32 %v170_v37, %v150_v17 }
  0x3e   :  { %v176_v42 = vadd.f32 %v173_v39, %v172_v38  ;;  %v175_v43 = vmul.f32 %v171_v40, %v151_v20 }
  0x40   :  { %v177_v44 = vadd.f32 %v176_v42, %v174_v41 }
  0x42   :  { %v178_v45 = vadd.f32 %v177_v44, %v175_v43 }
  0x44   :  { %181 = vst [vmem:[#allocation7] sm:$0xff] %v178_v45 }
  0x45   :  { %192 = dma.vmem_to_hbm [thread:$0]  %s188_s24, 128, %s190_s27, [#allocation4]  }
  0x46   :  { %307 = dma.done.wait [#allocation4], 128  }
  0x47   :  { %308 = vsyncadd [#allocation4], 4294967168 }
  0x48   :  { %197 = vsyncpa [#allocation3], 1 }
  0x49   :  { %198 = vsyncpa [#allocation6], 1 }
  0x4a   :  { %199 = vsyncpa [#allocation4], 1 }

</bundles_post_ra>
